<compile_context>
chip_gen: v7x
topology: tpu7x:2x2x1
jax: 0.10.0
libtpu: 0.0.40
codegen_flags: <defaults>
</compile_context>

<pallas_src>
import functools

import jax
import jax.numpy as jnp
from jax.experimental import pallas as pl
from jax.experimental.pallas import tpu as pltpu

_LANE = 128
_SUBLANE = 8
_NEG_INF = jnp.float32(-1e30)


def _round_up(x, m):
    return (x + m - 1) // m * m


def _pick_tile(n_lane):
    """Largest lane-multiple row tile <= 1024 that still yields >= 2 grid steps
    (v7x megacore occupancy) whenever the problem is big enough."""
    if n_lane <= _LANE:
        return _LANE
    half = (n_lane // 2) // _LANE * _LANE
    return max(_LANE, min(1024, half))


def _bigram_logits_kernel(idx_ref, emb_ref, logits_ref):
    # idx_ref: (TILE_N, 1) int32, emb_ref: (V_pad, C_pad) f32
    tile_n = idx_ref.shape[0]
    c_pad = emb_ref.shape[1]
    iota = jax.lax.broadcasted_iota(jnp.int32, (tile_n, c_pad), 1)
    onehot = (idx_ref[...] == iota).astype(jnp.float32)            # (TILE_N, V_pad)
    logits = jnp.dot(onehot, emb_ref[...],
                     preferred_element_type=jnp.float32)           # (TILE_N, C_pad)
    logits_ref[...] = logits.astype(logits_ref.dtype)


def _bigram_loss_kernel(ids_ref, emb_ref, *out_refs, n_actual, write_logits):
    # ids_ref: (TILE_N, 2) int32 [idx | target], emb_ref: (V_pad, C_pad) f32.
    # Pad columns of emb_ref are pre-filled with -1e30 -> no in-kernel mask temp.
    if write_logits:
        logits_ref, losspart_ref = out_refs
    else:
        (losspart_ref,) = out_refs

    tile_n = ids_ref.shape[0]
    c_pad = emb_ref.shape[1]

    idx = ids_ref[:, 0:1]                                          # (TILE_N, 1)
    tgt = ids_ref[:, 1:2]                                          # (TILE_N, 1)

    # One shared iota: gather one-hot, target select (V == C so they coincide).
    iota = jax.lax.broadcasted_iota(jnp.int32, (tile_n, c_pad), 1)

    # Embedding gather as one-hot MXU matmul (kept in f32: must be exact).
    onehot = (idx == iota).astype(jnp.float32)                     # (TILE_N, V_pad)
    logits = jnp.dot(onehot, emb_ref[...],
                     preferred_element_type=jnp.float32)           # (TILE_N, C_pad)
    if write_logits:
        logits_ref[...] = logits.astype(logits_ref.dtype)

    # Cross entropy per row: logsumexp(logits) - logits[target].
    # Padded class columns already hold -1e30 -> exp underflows to 0 exactly.
    m = jnp.max(logits, axis=-1, keepdims=True)                    # (TILE_N, 1)
    lse = jnp.log(jnp.sum(jnp.exp(logits - m), axis=-1,
                          keepdims=True)) + m                      # (TILE_N, 1)
    tgt_logit = jnp.sum(jnp.where(tgt == iota, logits, 0.0),
                        axis=-1, keepdims=True)                    # (TILE_N, 1)
    rowloss = lse - tgt_logit                                      # (TILE_N, 1)

    # Mask padded rows (global row >= N) and emit one per-tile partial sum,
    # broadcast into a lane-dense (8, 128) block (no vst.msk partial stores).
    row0 = pl.program_id(0) * tile_n
    row_iota = jax.lax.broadcasted_iota(jnp.int32, (tile_n, 1), 0) + row0
    partial = jnp.sum(jnp.where(row_iota < n_actual, rowloss, 0.0))
    losspart_ref[...] = jnp.zeros_like(losspart_ref) + partial


class BigramLanguageModel:
    """JAX/Pallas port of the PyTorch BigramLanguageModel forward pass."""

    def __init__(self, emb):
        emb = jnp.asarray(emb, jnp.float32)
        self.vocab_size, self.n_classes = emb.shape
        v_pad = _round_up(self.vocab_size, _LANE)
        c_pad = _round_up(self.n_classes, _LANE)
        # Built once at setup.  Pad *columns* hold -1e30 (online logsumexp mask
        # baked into the table); pad *rows* are never selected (ids < vocab).
        self.emb_pad = (jnp.full((v_pad, c_pad), _NEG_INF, jnp.float32)
                        .at[:self.vocab_size, :self.n_classes].set(emb))

    def __call__(self, idx, targets=None, *, return_logits=True,
                 logits_dtype=jnp.float32):
        """Mirrors BigramLanguageModel.forward.

        idx: (B, T) int token ids.
        Returns (logits, loss):
          - targets is None -> logits (B, T, C), loss None
          - targets given   -> logits (B*T, C) (or None if return_logits=False),
                               loss scalar f32.
        """
        B, T = idx.shape
        N = B * T
        C = self.n_classes
        V_pad, C_pad = self.emb_pad.shape

        n_lane = _round_up(N, _LANE)
        tile_n = _pick_tile(n_lane)
        N_pad = _round_up(n_lane, tile_n)
        num_tiles = N_pad // tile_n

        cparams = pltpu.CompilerParams(dimension_semantics=("parallel",))
        emb_spec = pl.BlockSpec((V_pad, C_pad), lambda i: (0, 0))
        logits_spec = pl.BlockSpec((tile_n, C_pad), lambda i: (i, 0))
        logit_bytes = jnp.dtype(logits_dtype).itemsize

        # ------------------------------------------------------------------
        # Inference path: logits only, no softmax/loss work.
        # ------------------------------------------------------------------
        if targets is None:
            idx_pad = jnp.pad(idx.reshape(N).astype(jnp.int32),
                              (0, N_pad - N)).reshape(N_pad, 1)
            cost = pl.CostEstimate(
                flops=2 * N_pad * V_pad * C_pad,
                transcendentals=0,
                bytes_accessed=(N_pad * C_pad * logit_bytes
                                + V_pad * C_pad * 4 + N_pad * 4))
            logits_pad = pl.pallas_call(
                _bigram_logits_kernel,
                out_shape=jax.ShapeDtypeStruct((N_pad, C_pad), logits_dtype),
                grid=(num_tiles,),
                in_specs=[pl.BlockSpec((tile_n, 1), lambda i: (i, 0)), emb_spec],
                out_specs=logits_spec,
                compiler_params=cparams,
                cost_estimate=cost,
            )(idx_pad, self.emb_pad)
            return logits_pad[:N, :C].reshape(B, T, C), None

        # ------------------------------------------------------------------
        # Training path: logits (optional) + cross-entropy loss.
        # ------------------------------------------------------------------
        ids = jnp.stack([idx.reshape(N), targets.reshape(N)],
                        axis=-1).astype(jnp.int32)                 # (N, 2)
        ids_pad = jnp.pad(ids, ((0, N_pad - N), (0, 0)))           # (N_pad, 2)

        kernel = functools.partial(_bigram_loss_kernel, n_actual=N,
                                   write_logits=return_logits)
        losspart_shape = jax.ShapeDtypeStruct((num_tiles * _SUBLANE, _LANE),
                                              jnp.float32)
        losspart_spec = pl.BlockSpec((_SUBLANE, _LANE), lambda i: (i, 0))

        if return_logits:
            out_shape = (jax.ShapeDtypeStruct((N_pad, C_pad), logits_dtype),
                         losspart_shape)
            out_specs = (logits_spec, losspart_spec)
        else:
            out_shape = losspart_shape
            out_specs = losspart_spec

        logits_bytes = N_pad * C_pad * logit_bytes if return_logits else 0
        cost = pl.CostEstimate(
            flops=2 * N_pad * V_pad * C_pad + 6 * N_pad * C_pad,
            transcendentals=N_pad * C_pad + N_pad,
            bytes_accessed=(logits_bytes + V_pad * C_pad * 4 + N_pad * 8
                            + num_tiles * _SUBLANE * _LANE * 4))

        outs = pl.pallas_call(
            kernel,
            out_shape=out_shape,
            grid=(num_tiles,),
            in_specs=[pl.BlockSpec((tile_n, 2), lambda i: (i, 0)), emb_spec],
            out_specs=out_specs,
            compiler_params=cparams,
            cost_estimate=cost,
        )(ids_pad, self.emb_pad)

        if return_logits:
            logits_pad, losspart = outs
        else:
            losspart = outs

        # Each (8,128) block holds its tile's partial sum; pick one lane each.
        loss = jnp.sum(losspart[::_SUBLANE, 0]) / jnp.float32(N)

        if not return_logits:
            return None, loss
        return logits_pad[:N, :C], loss


if __name__ == "__main__":
    key = jax.random.PRNGKey(0)
    k_emb, k_idx, k_tgt = jax.random.split(key, 3)

    vocab_size = 65   # e.g. tiny-shakespeare char vocab
    B, T = 2, 8

    # nn.Embedding default init ~ N(0, 1)
    emb = jax.random.normal(k_emb, (vocab_size, vocab_size), dtype=jnp.float32)
    idx = jax.random.randint(k_idx, (B, T), 0, vocab_size, dtype=jnp.int32)
    targets = jax.random.randint(k_tgt, (B, T), 0, vocab_size, dtype=jnp.int32)

    model = BigramLanguageModel(emb)   # padded table built once here

    # Training-style path: logits (B*T, C) and scalar loss.
    logits, loss = model(idx, targets)
    jax.block_until_ready((logits, loss))

    # Loss-only path: no logits HBM writeback at all.
    _, loss_only = model(idx, targets, return_logits=False)
    jax.block_until_ready(loss_only)

    # Inference path: logits (B, T, C), loss None.
    logits3d, loss_none = model(idx)
    jax.block_until_ready(logits3d)

    # Plain-JAX reference.
    ref_logits = emb[idx.reshape(-1)]
    ref_lse = jax.nn.logsumexp(ref_logits, axis=-1)
    ref_tgt = ref_logits[jnp.arange(B * T), targets.reshape(-1)]
    ref_loss = jnp.mean(ref_lse - ref_tgt)

    assert logits.shape == (B * T, vocab_size)
    assert jnp.allclose(logits, ref_logits, atol=1e-4), "logits mismatch"
    assert jnp.allclose(loss, ref_loss, atol=1e-4), "loss mismatch"
    assert jnp.allclose(loss_only, ref_loss, atol=1e-4), "loss-only mismatch"
    assert loss_none is None
    assert jnp.allclose(logits3d, ref_logits.reshape(B, T, vocab_size),
                        atol=1e-4), "3d logits mismatch"

    print("KERNEL_OK")
</pallas_src>

<mosaic_0001>
module attributes {stable_mosaic.version = 11 : i64} {
  func.func @_bigram_loss_kernel(%arg0: i32, %arg1: memref<128x2xi32, #tpu.memory_space<vmem>>, %arg2: memref<128x128xf32, #tpu.memory_space<vmem>>, %arg3: memref<128x128xf32, #tpu.memory_space<vmem>>, %arg4: memref<8x128xf32, #tpu.memory_space<vmem>>) attributes {dimension_semantics = [#tpu.dimension_semantics<parallel>], iteration_bounds = array<i64: 1>, scalar_prefetch = 0 : i64, scratch_operands = 0 : i64, tpu.core_type = #tpu.core_type<tc>, window_params = [{transform_indices = @transform_0, window_bounds = array<i64: 128, 2>}, {pipeline_mode = #tpu.pipeline_mode<synchronous>, transform_indices = @transform_1, window_bounds = array<i64: 128, 128>}, {transform_indices = @transform_2, window_bounds = array<i64: 128, 128>}, {transform_indices = @transform_3, window_bounds = array<i64: 8, 128>}]} {
    %c0 = arith.constant 0 : index
    %c0_0 = arith.constant 0 : index
    %0 = vector.load %arg1[%c0, %c0_0] : memref<128x2xi32, #tpu.memory_space<vmem>>, vector<128x1xi32>
    %c0_1 = arith.constant 0 : index
    %c1 = arith.constant 1 : index
    %1 = vector.load %arg1[%c0_1, %c1] : memref<128x2xi32, #tpu.memory_space<vmem>>, vector<128x1xi32>
    %2 = tpu.iota {dimensions = array<i32: 1>} : vector<128x128xi32>
    %3 = vector.broadcast %0 : vector<128x1xi32> to vector<128x128xi32>
    %4 = arith.cmpi eq, %3, %2 : vector<128x128xi32>
    %5 = arith.extui %4 : vector<128x128xi1> to vector<128x128xi32>
    %6 = arith.sitofp %5 : vector<128x128xi32> to vector<128x128xf32>
    %c0_2 = arith.constant 0 : index
    %c0_3 = arith.constant 0 : index
    %7 = vector.load %arg2[%c0_2, %c0_3] : memref<128x128xf32, #tpu.memory_space<vmem>>, vector<128x128xf32>
    %cst = arith.constant dense<0.000000e+00> : vector<128x128xf32>
    %8 = tpu.matmul %6, %7, %cst {dimension_numbers = #tpu.dot_dimension_numbers<[1], [0], [0], [1], [0, 0, 1, 1], [], []>} : vector<128x128xf32>, vector<128x128xf32>, vector<128x128xf32> -> vector<128x128xf32>
    %c0_4 = arith.constant 0 : index
    %c0_5 = arith.constant 0 : index
    %9 = vector.load %arg3[%c0_4, %c0_5] : memref<128x128xf32, #tpu.memory_space<vmem>>, vector<128x128xf32>
    tpu.vector_store %arg3[%c0_4, %c0_5], %8 {strides = array<i32>} : memref<128x128xf32, #tpu.memory_space<vmem>>, vector<128x128xf32>,
    %cst_6 = arith.constant dense<0xFF800000> : vector<128xf32>
    %10 = vector.multi_reduction <maximumf>, %8, %cst_6 [1] : vector<128x128xf32> to vector<128xf32>
    %11 = vector.shape_cast %10 : vector<128xf32> to vector<128x1xf32>
    %12 = vector.broadcast %11 : vector<128x1xf32> to vector<128x128xf32>
    %13 = arith.subf %8, %12 : vector<128x128xf32>
    %14 = math.exp %13 : vector<128x128xf32>
    %cst_7 = arith.constant dense<0.000000e+00> : vector<128xf32>
    %15 = vector.multi_reduction <add>, %14, %cst_7 [1] : vector<128x128xf32> to vector<128xf32>
    %16 = vector.shape_cast %15 : vector<128xf32> to vector<128x1xf32>
    %17 = math.log %16 : vector<128x1xf32>
    %18 = arith.addf %17, %11 : vector<128x1xf32>
    %19 = vector.broadcast %1 : vector<128x1xi32> to vector<128x128xi32>
    %20 = arith.cmpi eq, %19, %2 : vector<128x128xi32>
    %cst_8 = arith.constant 0.000000e+00 : f32
    %21 = vector.broadcast %cst_8 : f32 to vector<128x128xf32>
    %22 = arith.select %20, %8, %21 : vector<128x128xi1>, vector<128x128xf32>
    %cst_9 = arith.constant dense<0.000000e+00> : vector<128xf32>
    %23 = vector.multi_reduction <add>, %22, %cst_9 [1] : vector<128x128xf32> to vector<128xf32>
    %24 = vector.shape_cast %23 : vector<128xf32> to vector<128x1xf32>
    %25 = arith.subf %18, %24 : vector<128x1xf32>
    %c128_i32 = arith.constant 128 : i32
    %26 = arith.muli %arg0, %c128_i32 : i32
    %27 = tpu.iota {dimensions = array<i32: 0>} : vector<128x1xi32>
    %28 = vector.broadcast %26 : i32 to vector<128x1xi32>
    %29 = arith.addi %27, %28 : vector<128x1xi32>
    %c16_i32 = arith.constant 16 : i32
    %30 = vector.broadcast %c16_i32 : i32 to vector<128x1xi32>
    %31 = arith.cmpi slt, %29, %30 : vector<128x1xi32>
    %cst_10 = arith.constant 0.000000e+00 : f32
    %32 = vector.broadcast %cst_10 : f32 to vector<128x1xf32>
    %33 = arith.select %31, %25, %32 : vector<128x1xi1>, vector<128x1xf32>
    %34 = vector.shape_cast %33 : vector<128x1xf32> to vector<1x128x1xf32>
    %cst_11 = arith.constant dense<0.000000e+00> : vector<1xf32>
    %35 = vector.multi_reduction <add>, %34, %cst_11 [1, 2] : vector<1x128x1xf32> to vector<1xf32>
    %36 = vector.shape_cast %35 : vector<1xf32> to vector<1x1x1xf32>
    %37 = vector.extract %36[0, 0, 0] : f32 from vector<1x1x1xf32>
    %cst_12 = arith.constant 0.000000e+00 : f32
    %38 = vector.broadcast %cst_12 : f32 to vector<8x128xf32>
    %39 = vector.broadcast %37 : f32 to vector<8x128xf32>
    %40 = arith.addf %38, %39 : vector<8x128xf32>
    %c0_13 = arith.constant 0 : index
    %c0_14 = arith.constant 0 : index
    %41 = vector.load %arg4[%c0_13, %c0_14] : memref<8x128xf32, #tpu.memory_space<vmem>>, vector<8x128xf32>
    tpu.vector_store %arg4[%c0_13, %c0_14], %40 {strides = array<i32>} : memref<8x128xf32, #tpu.memory_space<vmem>>, vector<8x128xf32>,
    return
  }
  func.func @transform_0(%arg0: i32) -> (i32, i32) {
    %c0_i32 = arith.constant 0 : i32
    %c0_i32_0 = arith.constant 0 : i32
    return %arg0, %c0_i32 : i32, i32
  }
  func.func @transform_1(%arg0: i32) -> (i32, i32) {
    %c0_i32 = arith.constant 0 : i32
    %c0_i32_0 = arith.constant 0 : i32
    %c0_i32_1 = arith.constant 0 : i32
    return %c0_i32, %c0_i32_0 : i32, i32
  }
  func.func @transform_2(%arg0: i32) -> (i32, i32) {
    %c0_i32 = arith.constant 0 : i32
    %c0_i32_0 = arith.constant 0 : i32
    return %arg0, %c0_i32 : i32, i32
  }
  func.func @transform_3(%arg0: i32) -> (i32, i32) {
    %c0_i32 = arith.constant 0 : i32
    %c0_i32_0 = arith.constant 0 : i32
    return %arg0, %c0_i32 : i32, i32
  }
}

</mosaic_0001>

<bundles_post_ra>
// kernel: tpu_custom_call.1
= control target key start
LH: loop header
LB: loop body
LE: loop exit
PB: predicated region body
PF: predicated region fallthrough
CT: control target
= control target key end

     0   :  { %9 = vsyncpa [#allocation3], 0  ;;  %v972_v1 = vmov 0   ;;  %s1147_s0 = inlined_call_operand.vmem [shape: s32[128,2], index: 0, kind: input, shape index: {}]   ;;  %s1148_s1 = inlined_call_operand.vmem [shape: f32[128,128], index: 1, kind: input, shape index: {}]   ;;  %s1149_s2 = inlined_call_operand.hbm [shape: f32[128,128], index: 2, kind: output, shape index: {0}]   ;;  %s1150_s3 = inlined_call_operand.hbm [shape: f32[8,128], index: 3, kind: output, shape index: {1}]  }
   0x1   :  { %v1002_v0 = vld [vmem:[%s1147_s0] sm:$0xff]  ;;  %912 = vset.pattern.permute.xlu0 %v972_v1  ;;  %913 = vset.pattern.permute.xlu1 %v972_v1  ;;  %v24_v2 = vld [vmem:[%s1147_s0 + $0x48] sm:$0xff]  ;;  %v131_v6 = vld [vmem:[%s1148_s1 + $0x10] sm:$0xff] }
   0x2   :  { %34 = vperm.xlu0 %912, %v1002_v0   ;;  %61 = vperm.xlu1 %913, %v24_v2   ;;  %v1011_v3 = vld [vmem:[%s1147_s0 + $0x8] sm:$0xff]  ;;  %v129_v4 = vld [vmem:[%s1148_s1] sm:$0xff]  ;;  %v132_v8 = vld [vmem:[%s1148_s1 + $0x18] sm:$0xff] }
   0x3   :  { %v130_v5 = vld [vmem:[%s1148_s1 + $0x8] sm:$0xff]  ;;  %v859_v9 = vpack.c.bf16 %v132_v8, %v131_v6  ;;  %v133_v10 = vld [vmem:[%s1148_s1 + $0x20] sm:$0xff] }
   0x4   :  { %v855_v7 = vpack.c.bf16 %v130_v5, %v129_v4  ;;  %v134_v11 = vld [vmem:[%s1148_s1 + $0x28] sm:$0xff]  ;;  %v23_v12 = vld [vmem:[%s1147_s0 + $0x40] sm:$0xff] }
   0x5   :  { %v863_v13 = vpack.c.bf16 %v134_v11, %v133_v10 }
   0x6   :  { %37 = vperm.xlu0 %912, %v1011_v3   ;;  %856 = vmatprep.subr.bf16.mxu0 %v855_v7 }
   0x7   :  { %887 = vmatprep.subr.bf16.mxu1 %v855_v7  ;;  %858 = vmatpush3.bf16.msra.mxu0 %v855_v7 }
   0x8   :  { %895 = vmatpush3.bf16.msra.mxu1 %v855_v7  ;;  %860 = vmatprep.subr.bf16.mxu0 %v859_v9 }
   0x9   :  { %888 = vmatprep.subr.bf16.mxu1 %v859_v9 }
   0xa   :  { %10 = vsyncpa [#allocation5], 0  ;;  %58 = vperm.xlu0 %912, %v23_v12   ;;  %v135_v14 = vld [vmem:[%s1148_s1 + $0x30] sm:$0xff]  ;;  %v136_v15 = vld [vmem:[%s1148_s1 + $0x38] sm:$0xff]  ;;  %v973_v39 = vmov 1   ;;  %v31_v42 = vlaneseq  ;;  %v974_v45 = vmov 1.0  }
   0xb   :  { %v17_v16 = vld [vmem:[%s1147_s0 + $0x10] sm:$0xff]  ;;  %862 = vmatpush3.bf16.msra.mxu0 %v859_v9  ;;  %v867_v17 = vpack.c.bf16 %v136_v15, %v135_v14  ;;  %v137_v18 = vld [vmem:[%s1148_s1 + $0x40] sm:$0xff]  ;;  %v138_v19 = vld [vmem:[%s1148_s1 + $0x48] sm:$0xff] }
   0xc   :  { %896 = vmatpush3.bf16.msra.mxu1 %v859_v9  ;;  %864 = vmatprep.subr.bf16.mxu0 %v863_v13  ;;  %v25_v20 = vld [vmem:[%s1147_s0 + $0x50] sm:$0xff]  ;;  %v871_v21 = vpack.c.bf16 %v138_v19, %v137_v18  ;;  %v140_v23 = vld [vmem:[%s1148_s1 + $0x58] sm:$0xff]  ;;  %v141_v26 = vld [vmem:[%s1148_s1 + $0x60] sm:$0xff]  ;;  %v1102_v43 = vand.u32 127, %v31_v42 }
   0xd   :  { %889 = vmatprep.subr.bf16.mxu1 %v863_v13  ;;  %v139_v22 = vld [vmem:[%s1148_s1 + $0x50] sm:$0xff]  ;;  %v18_v24 = vld [vmem:[%s1147_s0 + $0x18] sm:$0xff]  ;;  %v142_v27 = vld [vmem:[%s1148_s1 + $0x68] sm:$0xff] }
   0xe   :  { %40 = vperm.xlu0 %912, %v17_v16   ;;  %v875_v25 = vpack.c.bf16 %v140_v23, %v139_v22  ;;  %v26_v28 = vld [vmem:[%s1147_s0 + $0x58] sm:$0xff]  ;;  %v879_v29 = vpack.c.bf16 %v142_v27, %v141_v26  ;;  %v143_v30 = vld [vmem:[%s1148_s1 + $0x70] sm:$0xff]  ;;  %v27_v32 = vld [vmem:[%s1147_s0 + $0x60] sm:$0xff] }
   0xf   :  { %866 = vmatpush3.bf16.msra.mxu0 %v863_v13  ;;  %v144_v31 = vld [vmem:[%s1148_s1 + $0x78] sm:$0xff]  ;;  %v28_v34 = vld [vmem:[%s1147_s0 + $0x68] sm:$0xff]  ;;  %v29_v35 = vld [vmem:[%s1147_s0 + $0x70] sm:$0xff] }
  0x10   :  { %897 = vmatpush3.bf16.msra.mxu1 %v863_v13  ;;  %868 = vmatprep.subr.bf16.mxu0 %v867_v17  ;;  %v883_v33 = vpack.c.bf16 %v144_v31, %v143_v30  ;;  %v30_v36 = vld [vmem:[%s1147_s0 + $0x78] sm:$0xff]  ;;  %v19_v37 = vld [vmem:[%s1147_s0 + $0x20] sm:$0xff]  ;;  %v20_v38 = vld [vmem:[%s1147_s0 + $0x28] sm:$0xff] }
  0x11   :  { %890 = vmatprep.subr.bf16.mxu1 %v867_v17  ;;  %46 = vperm.xlu1 %913, %v19_v37   ;;  %v21_v40 = vld [vmem:[%s1147_s0 + $0x30] sm:$0xff]  ;;  %v22_v41 = vld [vmem:[%s1147_s0 + $0x38] sm:$0xff]  ;;  %s975_s0 = smov [#allocation2]  }
  0x12   :  { %64 = vperm.xlu0 %912, %v25_v20   ;;  %s710_s21 = sshll.u32 %s975_s0, 4  ;;  %s711_s21 = int_to_ptr.vmem [resolvable:$true] %s710_s21 }
  0x13   :  { %870 = vmatpush3.bf16.msra.mxu0 %v867_v17  ;;  %s924_s22 = scalar_lea.vmem %s711_s21, 2048  ;;  %p929_p1 = scmp.lt.s32.totalorder %s711_s21, %s711_s21 }
  0x14   :  { %898 = vmatpush3.bf16.msra.mxu1 %v867_v17  ;;  %872 = vmatprep.subr.bf16.mxu0 %v871_v21  ;;  %p925_p0 = scmp.ne.s32.totalorder %s711_s21, %s924_s22  ;;  %p930_p2 = scmp.lt.s32.totalorder %s924_s22, %s924_s22 }
  0x15   :  { %891 = vmatprep.subr.bf16.mxu1 %v871_v21  ;;  %49 = vperm.xlu1 %913, %v20_v38  }
  0x16   :  { %43 = vperm.xlu0 %912, %v18_v24   ;;  %p931_p3 = por %p930_p2, %p929_p1 }
  0x17   :  { %874 = vmatpush3.bf16.msra.mxu0 %v871_v21 }
  0x18   :  { %899 = vmatpush3.bf16.msra.mxu1 %v871_v21  ;;  %876 = vmatprep.subr.bf16.mxu0 %v875_v25  ;;  %p932_p4 = pnand %p931_p3, %p925_p0 }
  0x19   :  { %892 = vmatprep.subr.bf16.mxu1 %v875_v25  ;;  %52 = vperm.xlu1 %913, %v21_v40  }
  0x1a   :  { %67 = vperm.xlu0 %912, %v26_v28  }
  0x1b   :  { %878 = vmatpush3.bf16.msra.mxu0 %v875_v25 }
  0x1c   :  { %900 = vmatpush3.bf16.msra.mxu1 %v875_v25  ;;  %880 = vmatprep.subr.bf16.mxu0 %v879_v29 }
  0x1d   :  { %893 = vmatprep.subr.bf16.mxu1 %v879_v29  ;;  %55 = vperm.xlu1 %913, %v22_v41  }
  0x1e   :  { %70 = vperm.xlu0 %912, %v27_v32  }
  0x1f   :  { %882 = vmatpush3.bf16.msra.mxu0 %v879_v29 }
  0x20   :  { %901 = vmatpush3.bf16.msra.mxu1 %v879_v29  ;;  %884 = vmatprep.subr.bf16.mxu0 %v883_v33 }
  0x21   :  { %894 = vmatprep.subr.bf16.mxu1 %v883_v33  ;;  %914 = vset.pattern.permute.xlu1 %v973_v39 }
  0x22   :  { %73 = vperm.xlu0 %912, %v28_v34  }
  0x23   :  { %886 = vmatpush3.bf16.msra.mxu0 %v883_v33 }
  0x24   :  { %902 = vmatpush3.bf16.msra.mxu1 %v883_v33 }
  0x26   :  { %76 = vperm.xlu0 %912, %v29_v35  }
  0x2a   :  { %79 = vperm.xlu0 %912, %v30_v36  }
  0x2e   :  { %915 = vset.pattern.permute.xlu0 %v973_v39 }
  0x2f   :  { %470 = vperm.xlu0 %915, %v1011_v3  }
  0x81   :  { %v35_v44 = vpop.permute.xlu0 %34  ;;  %v62_v47 = vpop.permute.xlu1 %61 }
  0x82   :  { %vm81_vm0 = vcmp.eq.s32.totalorder %v35_v44, %v1102_v43  ;;  %vm90_vm2 = vcmp.eq.s32.totalorder %v62_v47, %v1102_v43 }
  0x83   :  { %831 = vmatprep.mubr.msk.f32.mxu0 %vm81_vm0, %v974_v45 }
  0x85   :  { %v38_v46 = vpop.permute.xlu0 %37 }
  0x86   :  { %vm82_vm1 = vcmp.eq.s32.totalorder %v38_v46, %v1102_v43 }
  0x87   :  { %832 = vmatmul.mubr.msk.f32.vlgmr.msra.gmra.mrb[0].mxu0 %vm82_vm1, %v974_v45 }
  0x89   :  { %v59_v48 = vpop.permute.xlu0 %58 }
  0x8a   :  { %vm89_vm3 = vcmp.eq.s32.totalorder %v59_v48, %v1102_v43 }
  0x8b   :  { %843 = vmatprep.mubr.msk.f32.mxu1 %vm89_vm3, %v974_v45 }
  0x8c   :  { %844 = vmatmul.mubr.msk.f32.vlgmr.msra.gmra.mrb[0].mxu1 %vm90_vm2, %v974_v45  ;;  %vm661_vm2 = vcmask 7168  }
  0x8d   :  { %v41_v49 = vpop.permute.xlu0 %40 }
  0x8e   :  { %vm83_vm4 = vcmp.eq.s32.totalorder %v41_v49, %v1102_v43 }
  0x8f   :  { %834 = vmatprep.mubr.msk.f32.mxu0 %vm83_vm4, %v974_v45 }
  0x90   :  { %v47_v57 = vpop.permute.xlu1 %46 }
  0x91   :  { %v65_v50 = vpop.permute.xlu0 %64  ;;  %vm85_vm12 = vcmp.eq.s32.totalorder %v47_v57, %v1102_v43 }
  0x92   :  { %vm91_vm5 = vcmp.eq.s32.totalorder %v65_v50, %v1102_v43 }
  0x93   :  { %846 = vmatprep.mubr.msk.f32.mxu1 %vm91_vm5, %v974_v45 }
  0x94   :  { %v50_v58 = vpop.permute.xlu1 %49 }
  0x95   :  { %v44_v51 = vpop.permute.xlu0 %43  ;;  %vm86_vm13 = vcmp.eq.s32.totalorder %v50_v58, %v1102_v43 }
  0x96   :  { %vm84_vm6 = vcmp.eq.s32.totalorder %v44_v51, %v1102_v43 }
  0x97   :  { %835 = vmatmul.mubr.msk.f32.gmra.mrb[2].mxu0 %vm84_vm6, %v974_v45 }
  0x98   :  { %837 = vmatprep.mubr.msk.f32.mxu0 %vm85_vm12, %v974_v45  ;;  %v53_v59 = vpop.permute.xlu1 %52 }
  0x99   :  { %v68_v52 = vpop.permute.xlu0 %67  ;;  %vm87_vm14 = vcmp.eq.s32.totalorder %v53_v59, %v1102_v43 }
  0x9a   :  { %vm92_vm7 = vcmp.eq.s32.totalorder %v68_v52, %v1102_v43 }
  0x9b   :  { %847 = vmatmul.mubr.msk.f32.gmra.mrb[2].mxu1 %vm92_vm7, %v974_v45  ;;  %838 = vmatmul.mubr.msk.f32.gmra.mrb[4].mxu0 %vm86_vm13, %v974_v45 }
  0x9c   :  { %840 = vmatprep.mubr.msk.f32.mxu0 %vm87_vm14, %v974_v45  ;;  %v56_v60 = vpop.permute.xlu1 %55 }
  0x9d   :  { %v71_v53 = vpop.permute.xlu0 %70  ;;  %vm88_vm15 = vcmp.eq.s32.totalorder %v56_v60, %v1102_v43 }
  0x9e   :  { %vm93_vm8 = vcmp.eq.s32.totalorder %v71_v53, %v1102_v43 }
  0x9f   :  { %849 = vmatprep.mubr.msk.f32.mxu1 %vm93_vm8, %v974_v45  ;;  %841 = vmatmul.mubr.msk.f32.gmra.mrb[6].mxu0 %vm88_vm15, %v974_v45 }
  0xa1   :  { %v74_v54 = vpop.permute.xlu0 %73 }
  0xa2   :  { %vm94_vm9 = vcmp.eq.s32.totalorder %v74_v54, %v1102_v43 }
  0xa3   :  { %850 = vmatmul.mubr.msk.f32.gmra.mrb[4].mxu1 %vm94_vm9, %v974_v45 }
  0xa5   :  { %v77_v55 = vpop.permute.xlu0 %76 }
  0xa6   :  { %vm95_vm10 = vcmp.eq.s32.totalorder %v77_v55, %v1102_v43 }
  0xa7   :  { %852 = vmatprep.mubr.msk.f32.mxu1 %vm95_vm10, %v974_v45 }
  0xa9   :  { %v80_v56 = vpop.permute.xlu0 %79 }
  0xaa   :  { %vm96_vm11 = vcmp.eq.s32.totalorder %v80_v56, %v1102_v43 }
  0xab   :  { %853 = vmatmul.mubr.msk.f32.gmra.mrb[6].mxu1 %vm96_vm11, %v974_v45 }
  0xae   :  { %v471_v19 = vpop.permute.xlu0 %470 }
  0xaf   :  { %vm515_vm0 = vcmp.eq.s32.totalorder %v471_v19, %v1102_v43 }
 0x15a   :  { %v833_v61 = vpop.f32.mrb[0].mxu0 }
 0x15b   :  { %291 = vst [vmem:[#allocation2 + $0x8] sm:$0xff] %v833_v61  ;;  %308 = vmax.xlane.f32.xlu1 %v833_v61  ;;  %v211_v62 = vpop.f32.mrb[1].mxu0  ;;  %v531_v23 = vsel %vm515_vm0, %v833_v61, 0.0 }
 0x15c   :  { %290 = vst [vmem:[#allocation2] sm:$0xff] %v211_v62 }
 0x15f   :  { %306 = vmax.xlane.f32.xlu1 %v211_v62  ;;  %v845_v63 = vpop.f32.mrb[0].mxu1 }
 0x160   :  { %299 = vst [vmem:[#allocation2 + $0x48] sm:$0xff] %v845_v63  ;;  %v251_v1 = vpop.f32.mrb[1].mxu1 }
 0x161   :  { %298 = vst [vmem:[#allocation2 + $0x40] sm:$0xff] %v251_v1 }
 0x16a   :  { %v836_v2 = vpop.f32.mrb[2].mxu0 }
 0x16b   :  { %293 = vst [vmem:[#allocation2 + $0x18] sm:$0xff] %v836_v2  ;;  %v221_v3 = vpop.f32.mrb[3].mxu0 }
 0x16c   :  { %292 = vst [vmem:[#allocation2 + $0x10] sm:$0xff] %v221_v3 }
 0x16e   :  { %v848_v4 = vpop.f32.mrb[2].mxu1  ;;  %v839_v10 = vpop.f32.mrb[4].mxu0 }
 0x16f   :  { %301 = vst [vmem:[#allocation2 + $0x58] sm:$0xff] %v848_v4  ;;  %v261_v5 = vpop.f32.mrb[3].mxu1  ;;  %295 = vst [vmem:[#allocation2 + $0x28] sm:$0xff] %v839_v10  ;;  %v231_v11 = vpop.f32.mrb[5].mxu0 }
 0x170   :  { %300 = vst [vmem:[#allocation2 + $0x50] sm:$0xff] %v261_v5  ;;  %467 = vperm.xlu1 %914, %v1002_v0   ;;  %294 = vst [vmem:[#allocation2 + $0x20] sm:$0xff] %v231_v11 }
 0x172   :  { %v842_v12 = vpop.f32.mrb[6].mxu0 }
 0x173   :  { %297 = vst [vmem:[#allocation2 + $0x38] sm:$0xff] %v842_v12  ;;  %v241_v13 = vpop.f32.mrb[7].mxu0 }
 0x174   :  { %296 = vst [vmem:[#allocation2 + $0x30] sm:$0xff] %v241_v13 }
 0x176   :  { %v851_v6 = vpop.f32.mrb[4].mxu1 }
 0x177   :  { %303 = vst [vmem:[#allocation2 + $0x68] sm:$0xff] %v851_v6  ;;  %v271_v7 = vpop.f32.mrb[5].mxu1 }
 0x178   :  { %302 = vst [vmem:[#allocation2 + $0x60] sm:$0xff] %v271_v7 }
 0x17e   :  { %v854_v8 = vpop.f32.mrb[6].mxu1 }
 0x17f   :  { %305 = vst [vmem:[#allocation2 + $0x78] sm:$0xff] %v854_v8  ;;  %v281_v9 = vpop.f32.mrb[7].mxu1 }
 0x180   :  { %304 = vst [vmem:[#allocation2 + $0x70] sm:$0xff] %v281_v9 }
 0x1e8   :  { %v309_v14 = vpop.xlane.xlu1 %308 }
 0x1e9   :  { %v339_v15 = vsub.f32 %v833_v61, %v309_v14 }
 0x1eb   :  { %v356_v16 = vmul.f32 1.442695, %v339_v15 }
 0x1ec   :  { %v307_v0 = vpop.xlane.xlu1 %306 }
 0x1ed   :  { %916 = vpow2.f32 %v356_v16  ;;  %v338_v17 = vsub.f32 %v211_v62, %v307_v0 }
 0x1ef   :  { %v354_v18 = vmul.f32 1.442695, %v338_v17 }
 0x1f0   :  { %v468_v21 = vpop.permute.xlu1 %467 }
 0x1f1   :  { %918 = vpow2.f32 %v354_v18  ;;  %vm514_vm1 = vcmp.eq.s32.totalorder %v468_v21, %v1102_v43 }
 0x1f2   :  { %v530_v24 = vsel %vm514_vm1, %v211_v62, 0.0 }
 0x1f7   :  { %v917_v20 = vpop.eup %916 }
 0x1f8   :  { %388 = vadd.xlane.f32.xlu0 %v917_v20 }
 0x1fb   :  { %v919_v22 = vpop.eup %918 }
 0x1fc   :  { %386 = vadd.xlane.f32.xlu1 %v919_v22  ;;  %548 = vadd.xlane.f32.xlu0 %v531_v23 }
 0x200   :  { %546 = vadd.xlane.f32.xlu1 %v530_v24 }
 0x285   :  { %v389_v25 = vpop.xlane.xlu0 %388 }
 0x286   :  { %920 = vlog2.f32 %v389_v25 }
 0x289   :  { %v387_v26 = vpop.xlane.xlu1 %386  ;;  %v549_v32 = vpop.xlane.xlu0 %548 }
 0x28a   :  { %922 = vlog2.f32 %v387_v26 }
 0x28d   :  { %v547_v35 = vpop.xlane.xlu1 %546 }
 0x290   :  { %v921_v27 = vpop.eup %920 }
 0x291   :  { %v421_v28 = vmul.f32 0.6931472, %v921_v27 }
 0x293   :  { %v451_v29 = vadd.f32 %v421_v28, %v309_v14 }
 0x294   :  { %v923_v30 = vpop.eup %922 }
 0x295   :  { %v419_v31 = vmul.f32 0.6931472, %v923_v30  ;;  %v579_v33 = vsub.f32 %v451_v29, %v549_v32 }
 0x297   :  { %v450_v34 = vadd.f32 %v419_v31, %v307_v0  ;;  %v663_v38 = vsel %vm661_vm2, %v579_v33, 0.0 }
 0x299   :  { %v578_v36 = vsub.f32 %v450_v34, %v547_v35 }
 0x29b   :  { %v662_v37 = vsel %vm661_vm2, %v578_v36, 0.0 }
 0x29c   :  { %v664_v39 = vadd.f32 %v663_v38, %v662_v37 }
 0x29e   :  { %693 = vadd.xlane.f32.xlu1 %v664_v39 }
 0x29f   :  { %935 = shalt.err (!%p932_p4)
}
 0x2a0   :  { %s936_s25 = scalar_lea.hbm %s1149_s2, 2048 }
 0x2a1   :  { %p937_p5 = scmp.ne.s32.totalorder %s1149_s2, %s936_s25  ;;  %p940_p6 = scmp.lt.u32.totalorder %s936_s25, %s1149_s2 }
 0x2a3   :  { %p942_p7 = pnand %p940_p6, %p937_p5 }
 0x2a5   :  { %945 = shalt.err (!%p942_p7)
}
 0x2a6   :  { %s976_s30 = smov 128   ;;  %s977_s4 = smov 8  }
 0x2a7   :  { %716 = dma.vmem_to_hbm [thread:$0]  %s711_s21, 2048, %s1149_s2, [#allocation3], %s976_s30, %s976_s30, %s977_s4  }
 0x2a8   :  { %s978_s7 = smov [#allocation4]  }
 0x2a9   :  { %s723_s8 = sshll.u32 %s978_s7, 4  ;;  %s724_s8 = int_to_ptr.vmem [resolvable:$true] %s723_s8 }
 0x2aa   :  { %s946_s1 = scalar_lea.vmem %s724_s8, 128  ;;  %p951_p9 = scmp.lt.s32.totalorder %s724_s8, %s724_s8 }
 0x2ab   :  { %p947_p8 = scmp.ne.s32.totalorder %s724_s8, %s946_s1  ;;  %p952_p10 = scmp.lt.s32.totalorder %s946_s1, %s946_s1 }
 0x2ad   :  { %p953_p11 = por %p952_p10, %p951_p9 }
 0x2af   :  { %p954_p12 = pnand %p953_p11, %p947_p8 }
 0x32b   :  { %v694_v40 = vpop.xlane.xlu1 %693 }
 0x32c   :  { %v695_v41 = vrot.slane %v694_v40, 4 }
 0x32e   :  { %v696_v42 = vadd.f32 %v695_v41, %v694_v40 }
 0x330   :  { %v697_v43 = vrot.slane %v696_v42, 2 }
 0x332   :  { %v698_v44 = vadd.f32 %v697_v43, %v696_v42 }
 0x334   :  { %v699_v45 = vrot.slane %v698_v44, 1 }
 0x336   :  { %v700_v46 = vadd.f32 %v699_v45, %v698_v44 }
 0x338   :  { %903 = vpush %v700_v46 }
 0x369   :  { %s904_s9 = spop %903 }
 0x36a   :  { %v702_v47 = vstv %s904_s9 }
 0x36b   :  { %704 = vst [vmem:[#allocation4] sm:$0xff] %v702_v47 }
 0x36c   :  { %957 = shalt.err (!%p954_p12)
}
 0x36d   :  { %s958_s11 = scalar_lea.hbm %s1150_s3, 128 }
 0x36e   :  { %p959_p13 = scmp.ne.s32.totalorder %s1150_s3, %s958_s11  ;;  %p962_p0 = scmp.lt.u32.totalorder %s958_s11, %s1150_s3 }
 0x370   :  { %p964_p1 = pnand %p962_p0, %p959_p13 }
 0x372   :  { %967 = shalt.err (!%p964_p1)
}
 0x373   :  { %726 = dma.vmem_to_hbm [thread:$0]  %s724_s8, 128, %s1150_s3, [#allocation5]  }
 0x374   :  { %968 = dma.done.wait [#allocation3], 2048  }
 0x375   :  { %969 = vsyncadd [#allocation3], 4294965248 }
 0x376   :  { %970 = dma.done.wait [#allocation5], 128  }
 0x377   :  { %971 = vsyncadd [#allocation5], 4294967168 }
 0x378   :  { %733 = vsyncpa [#allocation3], 1 }
 0x379   :  { %734 = vsyncpa [#allocation5], 1 }

</bundles_post_ra>
